<compile_context>
chip_gen: v7x
topology: tpu7x:2x2x1
jax: 0.10.0
libtpu: 0.0.40
codegen_flags: <defaults>
</compile_context>

<pallas_src>
import jax
import jax.numpy as jnp
import numpy as np
from jax import lax
from jax.experimental import pallas as pl
from jax.experimental.pallas import tpu as pltpu

NUM_ASPECTS = 5
NUM_ASPECTS_PAD = 8          # padded to one f32 sublane group; padded columns/bias are zero
KSIZE = 3
_F32_TEMPS_PER_DOC = 12      # conservative count of live f32 (L, 8) temporaries per doc
                             # (tap outputs, boundary shifts, asp, asp^T, pre, exp, att, ...)


def _softmax_last(x):
    m = jnp.max(x, axis=-1, keepdims=True)
    e = jnp.exp(x - m)
    return e / jnp.sum(e, axis=-1, keepdims=True)


def _round_up(x, m):
    return ((x + m - 1) // m) * m


def _vmem_capacity_bytes():
    """Physical VMEM per TensorCore (v5e/v6e: 128 MiB, v7x: 64 MiB); conservative fallback."""
    try:
        info = pltpu.get_tpu_info()
        for attr in ("vmem_capacity_bytes", "vmem_bytes"):
            cap = getattr(info, attr, None)
            if cap:
                return int(cap)
    except Exception:
        pass
    return 64 * 1024 * 1024   # assume the smallest (v7x) if the query is unavailable


def _arl_vmem_budget():
    cap = _vmem_capacity_bytes()
    # scoped limit: <=48 MiB on v7x (64 MiB/TC), up to 96 MiB on v5e/v6e (128 MiB) ...
    vmem_limit = min(cap * 3 // 4, 96 * 1024 * 1024)
    # ... and size the per-step working set well under it (compiler scratch / spill headroom).
    working_set = int(vmem_limit * 0.6)
    return vmem_limit, working_set


def _pick_batch_tile(n, L, D, cdt_bytes, budget_bytes):
    """Docs per ARL grid step from a VMEM byte budget: double-buffered doc block + f32
    temporaries + output block + resident weights.  Multiple of 8 so the (tb, L) merges stay
    sublane-aligned; capped so the grid has >=2 steps (v7x: one per TensorCore)."""
    if n <= 16:
        return n                               # one full-array block; no alignment needed
    weight_bytes = (KSIZE * D * NUM_ASPECTS_PAD + L * L) * cdt_bytes + NUM_ASPECTS_PAD * 4
    per_doc = (2 * L * D * cdt_bytes                               # doc block, 2 buffers
               + _F32_TEMPS_PER_DOC * L * NUM_ASPECTS_PAD * 4      # f32 in-kernel temporaries
               + 2 * L * 4)                                        # (tb, L) f32 output, 2 buffers
    tb = int(max(budget_bytes - weight_bytes, per_doc) // per_doc)
    tb = max(8, (tb // 8) * 8)
    tb = min(tb, _round_up(pl.cdiv(n, 2), 8))  # >= 2 grid steps when the batch allows it
    return tb


# --------------------- Aspect Representation Learning (ARL) ---------------------
def arl_kernel(doc_ref, wconv_ref, bconv_ref, wsharedT_ref, rep_ref):
    """TB documents per grid step.

    doc_ref:      (TB, L, D)   word embeddings (compute dtype, bf16 by default)
    wconv_ref:    (3, D, NA)   per-tap conv kernels, aspect columns padded 5 -> 8 with zeros
    bconv_ref:    (1, NA) f32  conv bias (zero-padded)
    wsharedT_ref: (L, L)       shared_projection weight, transposed (W^T), compute dtype
    rep_ref:      (TB, L) f32  aspect-weighted document representation
    """
    TB, L, D = doc_ref.shape
    NA = wconv_ref.shape[2]

    doc = doc_ref[...].reshape(TB * L, D)

    # Conv2d(1, 5, (3, D)) as three accumulating per-tap matmuls; the l-1 / l+1 taps are
    # realized by shifting the 8-lane tap *outputs* by one word with a zero boundary row
    # per document (no (TB, L, 3D) im2col block and no doc-sized prev/next copies in VMEM).
    y_prev = jnp.dot(doc, wconv_ref[0], preferred_element_type=jnp.float32).reshape(TB, L, NA)
    y_cent = jnp.dot(doc, wconv_ref[1], preferred_element_type=jnp.float32).reshape(TB, L, NA)
    y_next = jnp.dot(doc, wconv_ref[2], preferred_element_type=jnp.float32).reshape(TB, L, NA)
    zrow = jnp.zeros((TB, 1, NA), jnp.float32)
    asp = (y_cent
           + jnp.concatenate([zrow, y_prev[:, :L - 1, :]], axis=1)   # tap on word l-1, 0 at l=0
           + jnp.concatenate([y_next[:, 1:, :], zrow], axis=1)       # tap on word l+1, 0 at l=L-1
           + bconv_ref[...])                                         # (TB, L, NA); padded cols stay 0

    # The one aspect-major relayout per step; (TB, NA, L) -> (TB*NA, L) is layout-free in
    # f32 since NA == 8 == f32 sublanes.  bf16 operands into the MXU (f32 x f32 would run as
    # multi-pass emulation on the bf16 MXU); accumulate in f32.
    asp_t = jnp.swapaxes(asp, 1, 2)                                  # (TB, NA, L) f32
    pre = jnp.dot(asp_t.reshape(TB * NA, L).astype(wsharedT_ref.dtype),
                  wsharedT_ref[...],
                  preferred_element_type=jnp.float32).reshape(TB, NA, L)

    # softmax over the real aspects (torch dim=1); padded aspects masked out.  Mask and exp
    # stay in f32 (-1e30 is not representable in bf16).
    a_idx = lax.broadcasted_iota(jnp.int32, (TB, NA, L), 1)
    pre = jnp.where(a_idx < NUM_ASPECTS, pre, -1e30)
    m = jnp.max(pre, axis=1, keepdims=True)
    e = jnp.exp(pre - m)
    att = e / jnp.sum(e, axis=1, keepdims=True)
    # Output is ~1/64 of the input bytes, so the narrow (L-lane) store is immaterial.
    rep_ref[...] = jnp.sum(att * asp_t, axis=1).astype(rep_ref.dtype)


def arl_forward(doc_emb, wconv, bconv, wshared):
    """doc_emb: (N, L, D); wconv: (3, D, 5) tap-major (wconv[dt, d, a] == torch w[a, 0, dt, d]);
    bconv: (1, 5); wshared: (L, L) torch (out, in).  Returns (N, L) f32."""
    N, L, D = doc_emb.shape
    cdt = doc_emb.dtype
    cdt_bytes = jnp.dtype(cdt).itemsize
    vmem_limit, budget = _arl_vmem_budget()
    tb = _pick_batch_tile(N, L, D, cdt_bytes, budget)
    n_pad = _round_up(N, tb)
    if n_pad != N:
        doc_emb = jnp.pad(doc_emb, ((0, n_pad - N), (0, 0), (0, 0)))

    wconv_pad = jnp.pad(wconv, ((0, 0), (0, 0), (0, NUM_ASPECTS_PAD - NUM_ASPECTS))).astype(cdt)
    bconv_pad = jnp.pad(bconv.reshape(1, NUM_ASPECTS),
                        ((0, 0), (0, NUM_ASPECTS_PAD - NUM_ASPECTS))).astype(jnp.float32)
    wshared_t = wshared.T.astype(cdt)      # kernel right-multiplies by W^T, bf16 MXU operand

    def _weight_specs(single_buffer):
        kw = {"pipeline_mode": pl.Buffered(1)} if single_buffer else {}
        return [
            pl.BlockSpec((KSIZE, D, NUM_ASPECTS_PAD), lambda b: (0, 0, 0), **kw),
            pl.BlockSpec((1, NUM_ASPECTS_PAD), lambda b: (0, 0), **kw),
            pl.BlockSpec((L, L), lambda b: (0, 0), **kw),
        ]

    def _call(single_buffer_weights):
        return pl.pallas_call(
            arl_kernel,
            out_shape=jax.ShapeDtypeStruct((n_pad, L), jnp.float32),
            grid_spec=pltpu.PrefetchScalarGridSpec(
                num_scalar_prefetch=0,
                grid=(n_pad // tb,),
                in_specs=[pl.BlockSpec((tb, L, D), lambda b: (b, 0, 0))]
                         + _weight_specs(single_buffer_weights),
                out_specs=pl.BlockSpec((tb, L), lambda b: (b, 0)),
            ),
            compiler_params=pltpu.CompilerParams(
                dimension_semantics=("parallel",),
                vmem_limit_bytes=vmem_limit),
        )(doc_emb, wconv_pad, bconv_pad, wshared_t)

    try:
        rep = _call(True)          # constant weights single-buffered (index_map never changes)
    except Exception:              # compatibility fallback if Buffered(1) is rejected
        rep = _call(False)
    return rep[:N]


# ------------------- Aspect Importance Estimation (AIE) -------------------
def aie_kernel(u_ref, i_ref, aff_ref, wu_ref, wi_ref, uo_ref, io_ref):
    u = u_ref[...]                                                   # (B, L)
    i = i_ref[...]                                                   # (B, L)
    ua = jnp.dot(u, aff_ref[...], preferred_element_type=jnp.float32)
    # (u @ A) @ i.T without materializing i.T: contract the L axes directly.
    affinity = lax.dot_general(ua, i, (((1,), (1,)), ((), ())),
                               preferred_element_type=jnp.float32)
    affinity = jnp.maximum(affinity, 0.0)                            # (B, B)
    u_proj = jnp.dot(u, wu_ref[...], preferred_element_type=jnp.float32)   # (B, E)
    # NOTE: original module projects u_fea with the item projection too (bug preserved).
    i_proj = jnp.dot(u, wi_ref[...], preferred_element_type=jnp.float32)   # (B, E)
    u_aux = jnp.dot(affinity, u_proj, preferred_element_type=jnp.float32)
    # affinity.T @ i_proj without the transpose: contract affinity's first axis.
    i_aux = lax.dot_general(affinity, i_proj, (((0,), (0,)), ((), ())),
                            preferred_element_type=jnp.float32)
    u_fea = jnp.maximum(u_proj + i_aux, 0.0)
    i_fea = jnp.maximum(i_proj + u_aux, 0.0)
    uo_ref[...] = _softmax_last(u_proj * u_fea).astype(uo_ref.dtype)
    io_ref[...] = _softmax_last(i_proj * i_fea).astype(io_ref.dtype)


def aie_forward(u_fea, i_fea, affinity_matrix, w_uproj, w_iproj):
    # Whole-batch kernel: fine while the (B, B) affinity fits comfortably in VMEM.
    # TODO(synk): tile AIE over B (row blocks for u, streamed col blocks for i, f32
    # accumulators for the affinity contractions) and feed the matmuls bf16 operands before
    # running at production batch sizes (B*B f32 + temps vs v7x's 64 MiB/TC VMEM).
    B, _ = u_fea.shape
    E = w_uproj.shape[0]
    vmem_limit, _ = _arl_vmem_budget()
    return pl.pallas_call(
        aie_kernel,
        out_shape=(jax.ShapeDtypeStruct((B, E), jnp.float32),
                   jax.ShapeDtypeStruct((B, E), jnp.float32)),
        compiler_params=pltpu.CompilerParams(vmem_limit_bytes=vmem_limit),
    )(u_fea, i_fea, affinity_matrix, w_uproj.T, w_iproj.T)


# ------------------------------- ANR forward -------------------------------
def anr_forward(params, uids, iids, user_doc, item_doc, *, compute_dtype=jnp.bfloat16):
    # Cast the tables once so the gathered (N, L, D) doc tensors land in HBM at half width;
    # all in-kernel matmuls still accumulate in f32.
    u_tab = params["user_emb"].astype(compute_dtype)
    i_tab = params["item_emb"].astype(compute_dtype)
    # TODO(synk): gather the embedding rows inside the ARL kernel (scalar-prefetched token
    # ids + manual DMA from an HBM-resident table) so the (N, L, D) doc tensor never
    # round-trips HBM — the dominant remaining traffic on bandwidth-bound v5e.
    user_emb = u_tab[user_doc]
    item_emb = i_tab[item_doc]
    # Two separate ARL calls: no wrapper-side concatenate (which would add a full HBM
    # write+read of the dominant (2N, L, D) tensor); re-uploading the small weights per
    # call is negligible by comparison.
    user_rep = arl_forward(user_emb, params["wconv"], params["bconv"], params["wshared"])
    item_rep = arl_forward(item_emb, params["wconv"], params["bconv"], params["wshared"])
    user_coo, item_coo = aie_forward(user_rep, item_rep, params["affinity"],
                                     params["w_uproj"], params["w_iproj"])
    # TODO(synk): RatingPrediction.forward is shape-inconsistent with the ARL output in the
    # given source (item_rep[k].unsqueeze(2) on a 1-D tensor raises in PyTorch) and its
    # result is discarded by ANR.forward, so the ratings branch is not reproduced.
    return user_rep, item_rep, user_coo, item_coo


# ----------------------------- pure-JAX reference -----------------------------
def arl_ref(doc_emb, wconv, bconv, wshared):
    # doc_emb / wconv are already rounded to the kernel compute dtype by the caller.
    docp = jnp.pad(doc_emb, ((0, 0), (1, 1), (0, 0)))
    B, Lp, _ = docp.shape
    L = Lp - 2
    asp = jnp.zeros((B, L, NUM_ASPECTS), jnp.float32) + bconv.reshape(1, 1, NUM_ASPECTS)
    for dt in range(KSIZE):
        asp = asp + jnp.einsum("bld,da->bla", docp[:, dt:dt + L, :], wconv[dt])
    # the kernel feeds the shared projection bf16 operands (f32 accumulate)
    asp_b = asp.astype(jnp.bfloat16).astype(jnp.float32)
    wsh_b = wshared.astype(jnp.bfloat16).astype(jnp.float32)
    att = jax.nn.softmax(jnp.einsum("ij,bja->bia", wsh_b, asp_b), axis=-1)
    return jnp.sum(att * asp, axis=-1)


def aie_ref(u, i, A, Wu, Wi):
    aff = jax.nn.relu((u @ A) @ i.T)
    u_proj = u @ Wu.T
    i_proj = u @ Wi.T
    u_aux = aff @ u_proj
    i_aux = aff.T @ i_proj
    uf = jax.nn.relu(u_proj + i_aux)
    if_ = jax.nn.relu(i_proj + u_aux)
    return jax.nn.softmax(u_proj * uf, axis=1), jax.nn.softmax(i_proj * if_, axis=1)


if __name__ == "__main__":
    B, L, D, E, V = 2, 16, 32, 8, 50
    key = jax.random.PRNGKey(0)
    ks = jax.random.split(key, 11)

    params = {
        "user_emb": jax.random.uniform(ks[0], (V, D), jnp.float32, minval=-0.1, maxval=0.1),
        "item_emb": jax.random.uniform(ks[1], (V, D), jnp.float32, minval=-0.1, maxval=0.1),
        # xavier-normal-style init for the conv kernel (tap-major layout (3, D, 5))
        "wconv": (jax.random.normal(ks[2], (KSIZE, D, NUM_ASPECTS), jnp.float32)
                  * np.sqrt(2.0 / (KSIZE * D + NUM_ASPECTS)).astype(np.float32)),
        "bconv": jnp.full((1, NUM_ASPECTS), 0.1, jnp.float32),
        "wshared": jax.random.uniform(ks[3], (L, L), jnp.float32, minval=-0.1, maxval=0.1),
        "affinity": jax.random.uniform(ks[4], (L, L), jnp.float32, minval=-0.1, maxval=0.1),
        "w_uproj": jax.random.uniform(ks[5], (E, L), jnp.float32, minval=-0.1, maxval=0.1),
        "w_iproj": jax.random.uniform(ks[6], (E, L), jnp.float32, minval=-0.1, maxval=0.1),
    }
    uids = jax.random.randint(ks[7], (B,), 0, 10)
    iids = jax.random.randint(ks[8], (B,), 0, 10)
    user_doc = jax.random.randint(ks[9], (B, L), 0, V)
    item_doc = jax.random.randint(ks[10], (B, L), 0, V)

    outs = anr_forward(params, uids, iids, user_doc, item_doc)
    user_rep, item_rep, ucoo, icoo = jax.block_until_ready(outs)

    # correctness check against a plain-JAX reference using the same bf16-rounded inputs
    cdt = jnp.bfloat16
    u_emb_ref = params["user_emb"].astype(cdt).astype(jnp.float32)[user_doc]
    i_emb_ref = params["item_emb"].astype(cdt).astype(jnp.float32)[item_doc]
    wconv_r = params["wconv"].astype(cdt).astype(jnp.float32)
    ur_ref = arl_ref(u_emb_ref, wconv_r, params["bconv"], params["wshared"])
    ir_ref = arl_ref(i_emb_ref, wconv_r, params["bconv"], params["wshared"])
    uc_ref, ic_ref = aie_ref(ur_ref, ir_ref, params["affinity"],
                             params["w_uproj"], params["w_iproj"])
    for name, got, ref in [("user_rep", user_rep, ur_ref), ("item_rep", item_rep, ir_ref),
                           ("user_coo", ucoo, uc_ref), ("item_coo", icoo, ic_ref)]:
        if not np.allclose(np.asarray(got), np.asarray(ref), rtol=2e-3, atol=1e-4):
            raise AssertionError(f"Pallas kernel does not match reference for {name}")

    print("KERNEL_OK")
</pallas_src>

<mosaic_0001>
module attributes {stable_mosaic.version = 11 : i64} {
  func.func @arl_kernel(%arg0: i32, %arg1: memref<2x16x32xbf16, #tpu.memory_space<vmem>>, %arg2: memref<3x32x8xbf16, #tpu.memory_space<vmem>>, %arg3: memref<1x8xf32, #tpu.memory_space<vmem>>, %arg4: memref<16x16xbf16, #tpu.memory_space<vmem>>, %arg5: memref<2x16xf32, #tpu.memory_space<vmem>>) attributes {dimension_semantics = [#tpu.dimension_semantics<parallel>], iteration_bounds = array<i64: 1>, scalar_prefetch = 0 : i64, scratch_operands = 0 : i64, tpu.core_type = #tpu.core_type<tc>, window_params = [{transform_indices = @transform_0, window_bounds = array<i64: 2, 16, 32>}, {pipeline_mode = #tpu.pipeline_mode<synchronous>, transform_indices = @transform_1, window_bounds = array<i64: 3, 32, 8>}, {pipeline_mode = #tpu.pipeline_mode<synchronous>, transform_indices = @transform_2, window_bounds = array<i64: 1, 8>}, {pipeline_mode = #tpu.pipeline_mode<synchronous>, transform_indices = @transform_3, window_bounds = array<i64: 16, 16>}, {transform_indices = @transform_4, window_bounds = array<i64: 2, 16>}]} {
    %c0 = arith.constant 0 : index
    %c0_0 = arith.constant 0 : index
    %c0_1 = arith.constant 0 : index
    %0 = vector.load %arg1[%c0, %c0_0, %c0_1] : memref<2x16x32xbf16, #tpu.memory_space<vmem>>, vector<2x16x32xbf16>
    %1 = vector.shape_cast %0 : vector<2x16x32xbf16> to vector<32x32xbf16>
    %c0_2 = arith.constant 0 : index
    %c0_3 = arith.constant 0 : index
    %c0_4 = arith.constant 0 : index
    %2 = vector.load %arg2[%c0_2, %c0_3, %c0_4] : memref<3x32x8xbf16, #tpu.memory_space<vmem>>, vector<1x32x8xbf16>
    %3 = vector.shape_cast %2 : vector<1x32x8xbf16> to vector<32x8xbf16>
    %cst = arith.constant dense<0.000000e+00> : vector<32x8xf32>
    %4 = tpu.matmul %1, %3, %cst {dimension_numbers = #tpu.dot_dimension_numbers<[1], [0], [0], [1], [0, 0, 1, 1], [], []>} : vector<32x32xbf16>, vector<32x8xbf16>, vector<32x8xf32> -> vector<32x8xf32>
    %5 = vector.shape_cast %4 : vector<32x8xf32> to vector<2x16x8xf32>
    %c1 = arith.constant 1 : index
    %c0_5 = arith.constant 0 : index
    %c0_6 = arith.constant 0 : index
    %6 = vector.load %arg2[%c1, %c0_5, %c0_6] : memref<3x32x8xbf16, #tpu.memory_space<vmem>>, vector<1x32x8xbf16>
    %7 = vector.shape_cast %6 : vector<1x32x8xbf16> to vector<32x8xbf16>
    %cst_7 = arith.constant dense<0.000000e+00> : vector<32x8xf32>
    %8 = tpu.matmul %1, %7, %cst_7 {dimension_numbers = #tpu.dot_dimension_numbers<[1], [0], [0], [1], [0, 0, 1, 1], [], []>} : vector<32x32xbf16>, vector<32x8xbf16>, vector<32x8xf32> -> vector<32x8xf32>
    %9 = vector.shape_cast %8 : vector<32x8xf32> to vector<2x16x8xf32>
    %c2 = arith.constant 2 : index
    %c0_8 = arith.constant 0 : index
    %c0_9 = arith.constant 0 : index
    %10 = vector.load %arg2[%c2, %c0_8, %c0_9] : memref<3x32x8xbf16, #tpu.memory_space<vmem>>, vector<1x32x8xbf16>
    %11 = vector.shape_cast %10 : vector<1x32x8xbf16> to vector<32x8xbf16>
    %cst_10 = arith.constant dense<0.000000e+00> : vector<32x8xf32>
    %12 = tpu.matmul %1, %11, %cst_10 {dimension_numbers = #tpu.dot_dimension_numbers<[1], [0], [0], [1], [0, 0, 1, 1], [], []>} : vector<32x32xbf16>, vector<32x8xbf16>, vector<32x8xf32> -> vector<32x8xf32>
    %13 = vector.shape_cast %12 : vector<32x8xf32> to vector<2x16x8xf32>
    %cst_11 = arith.constant 0.000000e+00 : f32
    %14 = vector.broadcast %cst_11 : f32 to vector<2x1x8xf32>
    %15 = vector.extract_strided_slice %5 {offsets = [0, 0, 0], sizes = [2, 15, 8], strides = [1, 1, 1]} : vector<2x16x8xf32> to vector<2x15x8xf32>
    %16 = tpu.concatenate %14, %15 in 1 : vector<2x1x8xf32>, vector<2x15x8xf32> -> vector<2x16x8xf32>
    %17 = arith.addf %9, %16 : vector<2x16x8xf32>
    %18 = vector.extract_strided_slice %13 {offsets = [0, 1, 0], sizes = [2, 15, 8], strides = [1, 1, 1]} : vector<2x16x8xf32> to vector<2x15x8xf32>
    %19 = tpu.concatenate %18, %14 in 1 : vector<2x15x8xf32>, vector<2x1x8xf32> -> vector<2x16x8xf32>
    %20 = arith.addf %17, %19 : vector<2x16x8xf32>
    %c0_12 = arith.constant 0 : index
    %c0_13 = arith.constant 0 : index
    %21 = vector.load %arg3[%c0_12, %c0_13] : memref<1x8xf32, #tpu.memory_space<vmem>>, vector<1x8xf32>
    %22 = vector.shape_cast %21 : vector<1x8xf32> to vector<1x1x8xf32>
    %23 = vector.broadcast %22 : vector<1x1x8xf32> to vector<2x16x8xf32>
    %24 = arith.addf %20, %23 : vector<2x16x8xf32>
    %25 = tpu.transpose %24, [0, 2, 1] : vector<2x16x8xf32> -> vector<2x8x16xf32>
    %26 = vector.shape_cast %25 : vector<2x8x16xf32> to vector<16x16xf32>
    %27 = arith.truncf %26 : vector<16x16xf32> to vector<16x16xbf16>
    %c0_14 = arith.constant 0 : index
    %c0_15 = arith.constant 0 : index
    %28 = vector.load %arg4[%c0_14, %c0_15] : memref<16x16xbf16, #tpu.memory_space<vmem>>, vector<16x16xbf16>
    %cst_16 = arith.constant dense<0.000000e+00> : vector<16x16xf32>
    %29 = tpu.matmul %27, %28, %cst_16 {dimension_numbers = #tpu.dot_dimension_numbers<[1], [0], [0], [1], [0, 0, 1, 1], [], []>} : vector<16x16xbf16>, vector<16x16xbf16>, vector<16x16xf32> -> vector<16x16xf32>
    %30 = vector.shape_cast %29 : vector<16x16xf32> to vector<2x8x16xf32>
    %31 = tpu.iota {dimensions = array<i32: 1>} : vector<2x8x16xi32>
    %c5_i32 = arith.constant 5 : i32
    %32 = vector.broadcast %c5_i32 : i32 to vector<2x8x16xi32>
    %33 = arith.cmpi slt, %31, %32 : vector<2x8x16xi32>
    %cst_17 = arith.constant -1.000000e+30 : f32
    %34 = vector.broadcast %cst_17 : f32 to vector<2x8x16xf32>
    %35 = arith.select %33, %30, %34 : vector<2x8x16xi1>, vector<2x8x16xf32>
    %cst_18 = arith.constant dense<0xFF800000> : vector<2x16xf32>
    %36 = vector.multi_reduction <maximumf>, %35, %cst_18 [1] : vector<2x8x16xf32> to vector<2x16xf32>
    %37 = vector.shape_cast %36 : vector<2x16xf32> to vector<2x1x16xf32>
    %38 = vector.broadcast %37 : vector<2x1x16xf32> to vector<2x8x16xf32>
    %39 = arith.subf %35, %38 : vector<2x8x16xf32>
    %40 = math.exp %39 : vector<2x8x16xf32>
    %cst_19 = arith.constant dense<0.000000e+00> : vector<2x16xf32>
    %41 = vector.multi_reduction <add>, %40, %cst_19 [1] : vector<2x8x16xf32> to vector<2x16xf32>
    %42 = vector.shape_cast %41 : vector<2x16xf32> to vector<2x1x16xf32>
    %43 = vector.broadcast %42 : vector<2x1x16xf32> to vector<2x8x16xf32>
    %44 = arith.divf %40, %43 : vector<2x8x16xf32>
    %45 = arith.mulf %44, %25 : vector<2x8x16xf32>
    %cst_20 = arith.constant dense<0.000000e+00> : vector<2x16xf32>
    %46 = vector.multi_reduction <add>, %45, %cst_20 [1] : vector<2x8x16xf32> to vector<2x16xf32>
    %c0_21 = arith.constant 0 : index
    %c0_22 = arith.constant 0 : index
    %47 = vector.load %arg5[%c0_21, %c0_22] : memref<2x16xf32, #tpu.memory_space<vmem>>, vector<2x16xf32>
    tpu.vector_store %arg5[%c0_21, %c0_22], %46 {strides = array<i32>} : memref<2x16xf32, #tpu.memory_space<vmem>>, vector<2x16xf32>,
    return
  }
  func.func @transform_0(%arg0: i32) -> (i32, i32, i32) {
    %c0_i32 = arith.constant 0 : i32
    %c0_i32_0 = arith.constant 0 : i32
    %c0_i32_1 = arith.constant 0 : i32
    return %arg0, %c0_i32, %c0_i32_0 : i32, i32, i32
  }
  func.func @transform_1(%arg0: i32) -> (i32, i32, i32) {
    %c0_i32 = arith.constant 0 : i32
    %c0_i32_0 = arith.constant 0 : i32
    %c0_i32_1 = arith.constant 0 : i32
    %c0_i32_2 = arith.constant 0 : i32
    return %c0_i32, %c0_i32_0, %c0_i32_1 : i32, i32, i32
  }
  func.func @transform_2(%arg0: i32) -> (i32, i32) {
    %c0_i32 = arith.constant 0 : i32
    %c0_i32_0 = arith.constant 0 : i32
    %c0_i32_1 = arith.constant 0 : i32
    return %c0_i32, %c0_i32_0 : i32, i32
  }
  func.func @transform_3(%arg0: i32) -> (i32, i32) {
    %c0_i32 = arith.constant 0 : i32
    %c0_i32_0 = arith.constant 0 : i32
    %c0_i32_1 = arith.constant 0 : i32
    return %c0_i32, %c0_i32_0 : i32, i32
  }
  func.func @transform_4(%arg0: i32) -> (i32, i32) {
    %c0_i32 = arith.constant 0 : i32
    %c0_i32_0 = arith.constant 0 : i32
    return %arg0, %c0_i32 : i32, i32
  }
}

module attributes {stable_mosaic.version = 11 : i64} {
  func.func @arl_kernel(%arg0: i32, %arg1: memref<2x16x32xbf16, #tpu.memory_space<vmem>>, %arg2: memref<3x32x8xbf16, #tpu.memory_space<vmem>>, %arg3: memref<1x8xf32, #tpu.memory_space<vmem>>, %arg4: memref<16x16xbf16, #tpu.memory_space<vmem>>, %arg5: memref<2x16xf32, #tpu.memory_space<vmem>>) attributes {dimension_semantics = [#tpu.dimension_semantics<parallel>], iteration_bounds = array<i64: 1>, scalar_prefetch = 0 : i64, scratch_operands = 0 : i64, tpu.core_type = #tpu.core_type<tc>, window_params = [{transform_indices = @transform_0, window_bounds = array<i64: 2, 16, 32>}, {pipeline_mode = #tpu.pipeline_mode<synchronous>, transform_indices = @transform_1, window_bounds = array<i64: 3, 32, 8>}, {pipeline_mode = #tpu.pipeline_mode<synchronous>, transform_indices = @transform_2, window_bounds = array<i64: 1, 8>}, {pipeline_mode = #tpu.pipeline_mode<synchronous>, transform_indices = @transform_3, window_bounds = array<i64: 16, 16>}, {transform_indices = @transform_4, window_bounds = array<i64: 2, 16>}]} {
    %c0 = arith.constant 0 : index
    %c0_0 = arith.constant 0 : index
    %c0_1 = arith.constant 0 : index
    %0 = vector.load %arg1[%c0, %c0_0, %c0_1] : memref<2x16x32xbf16, #tpu.memory_space<vmem>>, vector<2x16x32xbf16>
    %1 = vector.shape_cast %0 : vector<2x16x32xbf16> to vector<32x32xbf16>
    %c0_2 = arith.constant 0 : index
    %c0_3 = arith.constant 0 : index
    %c0_4 = arith.constant 0 : index
    %2 = vector.load %arg2[%c0_2, %c0_3, %c0_4] : memref<3x32x8xbf16, #tpu.memory_space<vmem>>, vector<1x32x8xbf16>
    %3 = vector.shape_cast %2 : vector<1x32x8xbf16> to vector<32x8xbf16>
    %cst = arith.constant dense<0.000000e+00> : vector<32x8xf32>
    %4 = tpu.matmul %1, %3, %cst {dimension_numbers = #tpu.dot_dimension_numbers<[1], [0], [0], [1], [0, 0, 1, 1], [], []>} : vector<32x32xbf16>, vector<32x8xbf16>, vector<32x8xf32> -> vector<32x8xf32>
    %5 = vector.shape_cast %4 : vector<32x8xf32> to vector<2x16x8xf32>
    %c1 = arith.constant 1 : index
    %c0_5 = arith.constant 0 : index
    %c0_6 = arith.constant 0 : index
    %6 = vector.load %arg2[%c1, %c0_5, %c0_6] : memref<3x32x8xbf16, #tpu.memory_space<vmem>>, vector<1x32x8xbf16>
    %7 = vector.shape_cast %6 : vector<1x32x8xbf16> to vector<32x8xbf16>
    %cst_7 = arith.constant dense<0.000000e+00> : vector<32x8xf32>
    %8 = tpu.matmul %1, %7, %cst_7 {dimension_numbers = #tpu.dot_dimension_numbers<[1], [0], [0], [1], [0, 0, 1, 1], [], []>} : vector<32x32xbf16>, vector<32x8xbf16>, vector<32x8xf32> -> vector<32x8xf32>
    %9 = vector.shape_cast %8 : vector<32x8xf32> to vector<2x16x8xf32>
    %c2 = arith.constant 2 : index
    %c0_8 = arith.constant 0 : index
    %c0_9 = arith.constant 0 : index
    %10 = vector.load %arg2[%c2, %c0_8, %c0_9] : memref<3x32x8xbf16, #tpu.memory_space<vmem>>, vector<1x32x8xbf16>
    %11 = vector.shape_cast %10 : vector<1x32x8xbf16> to vector<32x8xbf16>
    %cst_10 = arith.constant dense<0.000000e+00> : vector<32x8xf32>
    %12 = tpu.matmul %1, %11, %cst_10 {dimension_numbers = #tpu.dot_dimension_numbers<[1], [0], [0], [1], [0, 0, 1, 1], [], []>} : vector<32x32xbf16>, vector<32x8xbf16>, vector<32x8xf32> -> vector<32x8xf32>
    %13 = vector.shape_cast %12 : vector<32x8xf32> to vector<2x16x8xf32>
    %cst_11 = arith.constant 0.000000e+00 : f32
    %14 = vector.broadcast %cst_11 : f32 to vector<2x1x8xf32>
    %15 = vector.extract_strided_slice %5 {offsets = [0, 0, 0], sizes = [2, 15, 8], strides = [1, 1, 1]} : vector<2x16x8xf32> to vector<2x15x8xf32>
    %16 = tpu.concatenate %14, %15 in 1 : vector<2x1x8xf32>, vector<2x15x8xf32> -> vector<2x16x8xf32>
    %17 = arith.addf %9, %16 : vector<2x16x8xf32>
    %18 = vector.extract_strided_slice %13 {offsets = [0, 1, 0], sizes = [2, 15, 8], strides = [1, 1, 1]} : vector<2x16x8xf32> to vector<2x15x8xf32>
    %19 = tpu.concatenate %18, %14 in 1 : vector<2x15x8xf32>, vector<2x1x8xf32> -> vector<2x16x8xf32>
    %20 = arith.addf %17, %19 : vector<2x16x8xf32>
    %c0_12 = arith.constant 0 : index
    %c0_13 = arith.constant 0 : index
    %21 = vector.load %arg3[%c0_12, %c0_13] : memref<1x8xf32, #tpu.memory_space<vmem>>, vector<1x8xf32>
    %22 = vector.shape_cast %21 : vector<1x8xf32> to vector<1x1x8xf32>
    %23 = vector.broadcast %22 : vector<1x1x8xf32> to vector<2x16x8xf32>
    %24 = arith.addf %20, %23 : vector<2x16x8xf32>
    %25 = tpu.transpose %24, [0, 2, 1] : vector<2x16x8xf32> -> vector<2x8x16xf32>
    %26 = vector.shape_cast %25 : vector<2x8x16xf32> to vector<16x16xf32>
    %27 = arith.truncf %26 : vector<16x16xf32> to vector<16x16xbf16>
    %c0_14 = arith.constant 0 : index
    %c0_15 = arith.constant 0 : index
    %28 = vector.load %arg4[%c0_14, %c0_15] : memref<16x16xbf16, #tpu.memory_space<vmem>>, vector<16x16xbf16>
    %cst_16 = arith.constant dense<0.000000e+00> : vector<16x16xf32>
    %29 = tpu.matmul %27, %28, %cst_16 {dimension_numbers = #tpu.dot_dimension_numbers<[1], [0], [0], [1], [0, 0, 1, 1], [], []>} : vector<16x16xbf16>, vector<16x16xbf16>, vector<16x16xf32> -> vector<16x16xf32>
    %30 = vector.shape_cast %29 : vector<16x16xf32> to vector<2x8x16xf32>
    %31 = tpu.iota {dimensions = array<i32: 1>} : vector<2x8x16xi32>
    %c5_i32 = arith.constant 5 : i32
    %32 = vector.broadcast %c5_i32 : i32 to vector<2x8x16xi32>
    %33 = arith.cmpi slt, %31, %32 : vector<2x8x16xi32>
    %cst_17 = arith.constant -1.000000e+30 : f32
    %34 = vector.broadcast %cst_17 : f32 to vector<2x8x16xf32>
    %35 = arith.select %33, %30, %34 : vector<2x8x16xi1>, vector<2x8x16xf32>
    %cst_18 = arith.constant dense<0xFF800000> : vector<2x16xf32>
    %36 = vector.multi_reduction <maximumf>, %35, %cst_18 [1] : vector<2x8x16xf32> to vector<2x16xf32>
    %37 = vector.shape_cast %36 : vector<2x16xf32> to vector<2x1x16xf32>
    %38 = vector.broadcast %37 : vector<2x1x16xf32> to vector<2x8x16xf32>
    %39 = arith.subf %35, %38 : vector<2x8x16xf32>
    %40 = math.exp %39 : vector<2x8x16xf32>
    %cst_19 = arith.constant dense<0.000000e+00> : vector<2x16xf32>
    %41 = vector.multi_reduction <add>, %40, %cst_19 [1] : vector<2x8x16xf32> to vector<2x16xf32>
    %42 = vector.shape_cast %41 : vector<2x16xf32> to vector<2x1x16xf32>
    %43 = vector.broadcast %42 : vector<2x1x16xf32> to vector<2x8x16xf32>
    %44 = arith.divf %40, %43 : vector<2x8x16xf32>
    %45 = arith.mulf %44, %25 : vector<2x8x16xf32>
    %cst_20 = arith.constant dense<0.000000e+00> : vector<2x16xf32>
    %46 = vector.multi_reduction <add>, %45, %cst_20 [1] : vector<2x8x16xf32> to vector<2x16xf32>
    %c0_21 = arith.constant 0 : index
    %c0_22 = arith.constant 0 : index
    %47 = vector.load %arg5[%c0_21, %c0_22] : memref<2x16xf32, #tpu.memory_space<vmem>>, vector<2x16xf32>
    tpu.vector_store %arg5[%c0_21, %c0_22], %46 {strides = array<i32>} : memref<2x16xf32, #tpu.memory_space<vmem>>, vector<2x16xf32>,
    return
  }
  func.func @transform_0(%arg0: i32) -> (i32, i32, i32) {
    %c0_i32 = arith.constant 0 : i32
    %c0_i32_0 = arith.constant 0 : i32
    %c0_i32_1 = arith.constant 0 : i32
    return %arg0, %c0_i32, %c0_i32_0 : i32, i32, i32
  }
  func.func @transform_1(%arg0: i32) -> (i32, i32, i32) {
    %c0_i32 = arith.constant 0 : i32
    %c0_i32_0 = arith.constant 0 : i32
    %c0_i32_1 = arith.constant 0 : i32
    %c0_i32_2 = arith.constant 0 : i32
    return %c0_i32, %c0_i32_0, %c0_i32_1 : i32, i32, i32
  }
  func.func @transform_2(%arg0: i32) -> (i32, i32) {
    %c0_i32 = arith.constant 0 : i32
    %c0_i32_0 = arith.constant 0 : i32
    %c0_i32_1 = arith.constant 0 : i32
    return %c0_i32, %c0_i32_0 : i32, i32
  }
  func.func @transform_3(%arg0: i32) -> (i32, i32) {
    %c0_i32 = arith.constant 0 : i32
    %c0_i32_0 = arith.constant 0 : i32
    %c0_i32_1 = arith.constant 0 : i32
    return %c0_i32, %c0_i32_0 : i32, i32
  }
  func.func @transform_4(%arg0: i32) -> (i32, i32) {
    %c0_i32 = arith.constant 0 : i32
    %c0_i32_0 = arith.constant 0 : i32
    return %arg0, %c0_i32 : i32, i32
  }
}

</mosaic_0001>

<bundles_post_ra>
// kernel: tpu_custom_call.1
= control target key start
LH: loop header
LB: loop body
LE: loop exit
PB: predicated region body
PF: predicated region fallthrough
CT: control target
= control target key end

     0   :  { %vm49_vm0 = vcmask 261120   ;;  %s688_s0 = inlined_call_operand.vmem [shape: bf16[2,16,32], index: 0, kind: input, shape index: {}]   ;;  %s689_s1 = inlined_call_operand.vmem [shape: bf16[3,32,8], index: 1, kind: input, shape index: {}]   ;;  %s690_s2 = inlined_call_operand.vmem [shape: f32[1,8], index: 2, kind: input, shape index: {}]   ;;  %s691_s3 = inlined_call_operand.vmem [shape: bf16[16,16], index: 3, kind: input, shape index: {}]   ;;  %s692_s4 = inlined_call_operand.hbm [shape: f32[2,16], index: 4, kind: output, shape index: {}]  }
   0x1   :  { %v560_v0 = vld [vmem:[%s689_s1] sm:$0xff]   ;;  %v561_v1 = vld [vmem:[%s689_s1 + $0x10] sm:$0xff]   ;;  %v562_v2 = vld [vmem:[%s689_s1 + $0x8] sm:$0xff]  }
   0x2   :  { %527 = vmatprep.subr.bf16.mxu0 %v560_v0  ;;  %535 = vmatprep.subr.bf16.mxu1 %v561_v1  ;;  %v563_v3 = vld [vmem:[%s688_s0] sm:$0xff]   ;;  %v564_v4 = vld [vmem:[%s689_s1 + $0x18] sm:$0xff]   ;;  %v565_v5 = vld [vmem:[%s688_s0 + $0x8] sm:$0xff]  }
   0x3   :  { %528 = vmatpush3.bf16.msra.mxu0 %v560_v0  ;;  %536 = vmatpush3.bf16.msra.mxu1 %v561_v1  ;;  %v566_v6 = vld [vmem:[%s689_s1 + $0x20] sm:$0xff]   ;;  %v567_v7 = vld [vmem:[%s689_s1 + $0x28] sm:$0xff]  }
   0x4   :  { %529 = vmatprep.subr.bf16.mxu0 %v562_v2  ;;  %531 = vmatprep.mubr.msk.bf16.mxu0 %vm49_vm0, %v563_v3 }
   0x5   :  { %539 = vmatprep.mubr.msk.bf16.mxu1 %vm49_vm0, %v563_v3  ;;  %537 = vmatprep.subr.bf16.mxu1 %v564_v4 }
   0x7   :  { %530 = vmatpush3.bf16.msra.mxu0 %v562_v2  ;;  %538 = vmatpush3.bf16.msra.mxu1 %v564_v4 }
   0x8   :  { %543 = vmatprep.subr.bf16.mxu0 %v566_v6 }
   0x9   :  { %9 = vsyncpa [#allocation3], 0  ;;  %v568_v8 = vld [vmem:[%s691_s3] sm:$0xff]   ;;  %v601_v9 = vmov 0.0   ;;  %vm241_vm1 = vcmask 1040384   ;;  %vm262_vm2 = vcmask 1046528   ;;  %v408_v54 = vlaneseq }
   0xa   :  { %532 = vmatmul.mubr.msk.bf16.vlgmr.msra.gmra.mrb[0].mxu0 %vm49_vm0, %v565_v5  ;;  %540 = vmatmul.mubr.msk.bf16.vlgmr.msra.gmra.mrb[0].mxu1 %vm49_vm0, %v565_v5  ;;  %v510_v40 = vld [vmem:[%s690_s2] ss:$0 sm:$0xff]  ;;  %vm602_vm3 = vmmov 0   ;;  %vm363_vm4 = vcmask 130048   ;;  %s603_s2 = smov [#allocation2]   ;;  %vm469_vm6 = vcmask 1041409  }
   0xb   :  { %544 = vmatpush3.bf16.msra.mxu0 %v566_v6  ;;  %547 = vmatprep.mubr.msk.bf16.mxu0 %vm49_vm0, %v563_v3  ;;  %v409_v55 = vshrl.u32 %v408_v54, 7  ;;  %s480_s6 = sshll.u32 %s603_s2, 4  ;;  %vm472_vm7 = vcmask 123904   ;;  %s481_s6 = int_to_ptr.vmem [resolvable:$true] %s480_s6 }
   0xc   :  { %545 = vmatprep.subr.bf16.mxu0 %v567_v7  ;;  %551 = vmatprep.subr.bf16.mxu1 %v601_v9  ;;  %s577_s7 = scalar_lea.vmem %s481_s6, 32  ;;  %p582_p1 = scmp.lt.s32.totalorder %s481_s6, %s481_s6 }
   0xd   :  { %552 = vmatpush3.bf16.msra.mxu1 %v568_v8  ;;  %553 = vmatprep.mubr.msk.bf16.mxu1 %vm602_vm3, %v601_v9  ;;  %vm410_vm5 = vcmp.lt.s32.totalorder %v409_v55, 5  ;;  %p578_p0 = scmp.ne.s32.totalorder %s481_s6, %s577_s7  ;;  %p583_p2 = scmp.lt.s32.totalorder %s577_s7, %s577_s7 }
   0xf   :  { %546 = vmatpush3.bf16.msra.mxu0 %v567_v7  ;;  %p584_p3 = por %p583_p2, %p582_p1 }
  0x11   :  { %p585_p4 = pnand %p584_p3, %p578_p0 }
  0x12   :  { %548 = vmatmul.mubr.msk.bf16.vlgmr.msra.gmra.mrb[4].mxu0 %vm49_vm0, %v565_v5 }
  0xdd   :  { %v533_v10 = vpop.f32.mrb[0].mxu0  ;;  %v541_v13 = vpop.f32.mrb[0].mxu1 }
  0xde   :  { %v245_v11 = vrot.slane %v533_v10, 7  ;;  %v90_v12 = vpop.f32.mrb[1].mxu0  ;;  %v156_v16 = vpop.f32.mrb[1].mxu1 }
  0xdf   :  { %v242_v14 = vrot.slane %v90_v12, 7  ;;  %v534_v15 = vpop.f32.mrb[2].mxu0  ;;  %v542_v20 = vpop.f32.mrb[2].mxu1 }
  0xe0   :  { %v246_v17 = vrot.slane %v534_v15, 7  ;;  %v93_v18 = vpop.f32.mrb[3].mxu0  ;;  %v253_v19 = vsel %vm241_vm1, 0.0, %v245_v11  ;;  %v159_v24 = vpop.f32.mrb[3].mxu1 }
  0xe1   :  { %v243_v21 = vrot.slane %v93_v18, 7  ;;  %v256_v22 = vadd.f32 %v541_v13, %v253_v19  ;;  %v252_v23 = vsel %vm241_vm1, 0.0, %v242_v14 }
  0xe2   :  { %v254_v25 = vadd.f32 %v252_v23, %v156_v16  ;;  %v247_v26 = vsel %vm241_vm1, %v245_v11, %v246_v17 }
  0xe3   :  { %v257_v27 = vadd.f32 %v542_v20, %v247_v26  ;;  %v244_v28 = vsel %vm241_vm1, %v242_v14, %v243_v21 }
  0xe4   :  { %v255_v29 = vadd.f32 %v244_v28, %v159_v24 }
  0xe5   :  { %v549_v30 = vpop.f32.mrb[4].mxu0 }
  0xe6   :  { %v222_v31 = vpop.f32.mrb[5].mxu0  ;;  %v266_v33 = vrot.slane %v549_v30, 1 }
  0xe7   :  { %v550_v32 = vpop.f32.mrb[6].mxu0  ;;  %v263_v36 = vrot.slane %v222_v31, 1 }
  0xe8   :  { %v267_v34 = vrot.slane %v550_v32, 1  ;;  %v225_v35 = vpop.f32.mrb[7].mxu0 }
  0xe9   :  { %v264_v37 = vrot.slane %v225_v35, 1 }
  0xea   :  { %v274_v38 = vsel %vm262_vm2, %v267_v34, 0.0  ;;  %v268_v39 = vsel %vm262_vm2, %v266_v33, %v267_v34 }
  0xeb   :  { %v273_v41 = vsel %vm262_vm2, %v264_v37, 0.0  ;;  %v277_v42 = vadd.f32 %v268_v39, %v256_v22  ;;  %v265_v43 = vsel %vm262_vm2, %v263_v36, %v264_v37  ;;  %v278_v44 = vadd.f32 %v274_v38, %v257_v27 }
  0xec   :  { %v276_v45 = vadd.f32 %v273_v41, %v255_v29  ;;  %v275_v46 = vadd.f32 %v265_v43, %v254_v25 }
  0xed   :  { %v288_v47 = vadd.f32 %v510_v40, %v277_v42  ;;  %v289_v49 = vadd.f32 %v510_v40, %v278_v44 }
  0xee   :  { %v286_v48 = vadd.f32 %v510_v40, %v275_v46  ;;  %v287_v50 = vadd.f32 %v510_v40, %v276_v45 }
  0xef   :  { %322 = vxpose.xlu1.b32.start [1/2] (short) (narrow) %v288_v47, 8 }
  0xf0   :  { %290 = vxpose.xlu0.b32.start [1/2] (short) (narrow) %v286_v48, 8 }
  0xf3   :  { %323 = vxpose.xlu1.b32.end [2/2] (short) (narrow) %v289_v49, 8 }
  0xf4   :  { %291 = vxpose.xlu0.b32.end [2/2] (short) (narrow) %v287_v50, 8 }
 0x16f   :  { %v338_v51 = vpop.trf.xlu1 }
 0x170   :  { %v306_v52 = vpop.trf.xlu0 }
 0x171   :  { %v354_v53 = vpack.c.bf16 %v338_v51, %v306_v52 }
 0x173   :  { %554 = vmatmul.mubr.msk.bf16.vlgmr.msra.gmra.mrb[4].mxu1 %vm363_vm4, %v354_v53 }
 0x246   :  { %v401_v56 = vpop.f32.mrb[4].mxu1 }
 0x247   :  { %v411_v57 = vsel %vm410_vm5, %v401_v56, -1e+30  ;;  %v555_v58 = vpop.f32.mrb[5].mxu1 }
 0x248   :  { %v413_v59 = vsel %vm363_vm4, %v411_v57, -inf  ;;  %v404_v60 = vpop.f32.mrb[6].mxu1 }
 0x249   :  { %v414_v61 = vrot.slane %v413_v59, 4  ;;  %v412_v62 = vsel %vm410_vm5, %v404_v60, -1e+30  ;;  %v556_v63 = vpop.f32.mrb[7].mxu1 }
 0x24a   :  { %v420_v0 = vsel %vm363_vm4, %v412_v62, -inf }
 0x24b   :  { %v415_v1 = vmax.f32 %v413_v59, %v414_v61  ;;  %v421_v2 = vrot.slane %v420_v0, 4 }
 0x24d   :  { %v416_v3 = vrot.slane %v415_v1, 2  ;;  %v422_v4 = vmax.f32 %v420_v0, %v421_v2 }
 0x24f   :  { %v417_v5 = vmax.f32 %v415_v1, %v416_v3  ;;  %v423_v6 = vrot.slane %v422_v4, 2 }
 0x251   :  { %v418_v7 = vrot.slane %v417_v5, 1  ;;  %v424_v8 = vmax.f32 %v422_v4, %v423_v6 }
 0x253   :  { %v419_v9 = vmax.f32 %v417_v5, %v418_v7  ;;  %v425_v10 = vrot.slane %v424_v8, 1 }
 0x255   :  { %v427_v11 = vsub.f32 %v411_v57, %v419_v9  ;;  %v426_v12 = vmax.f32 %v424_v8, %v425_v10 }
 0x257   :  { %v429_v13 = vmul.f32 1.442695, %v427_v11  ;;  %v428_v14 = vsub.f32 %v412_v62, %v426_v12 }
 0x259   :  { %569 = vpow2.f32 %v429_v13  ;;  %v431_v15 = vmul.f32 1.442695, %v428_v14 }
 0x25b   :  { %571 = vpow2.f32 %v431_v15 }
 0x263   :  { %v570_v16 = vpop.eup %569 }
 0x264   :  { %v433_v17 = vsel %vm363_vm4, %v570_v16, 0.0 }
 0x265   :  { %v572_v18 = vpop.eup %571  ;;  %v434_v19 = vrot.slane %v433_v17, 4 }
 0x266   :  { %v440_v20 = vsel %vm363_vm4, %v572_v18, 0.0 }
 0x267   :  { %v435_v21 = vadd.f32 %v434_v19, %v433_v17  ;;  %v441_v22 = vrot.slane %v440_v20, 4 }
 0x269   :  { %v436_v23 = vrot.slane %v435_v21, 2  ;;  %v442_v24 = vadd.f32 %v441_v22, %v440_v20 }
 0x26b   :  { %v437_v25 = vadd.f32 %v436_v23, %v435_v21  ;;  %v443_v26 = vrot.slane %v442_v24, 2 }
 0x26d   :  { %v438_v27 = vrot.slane %v437_v25, 1  ;;  %v444_v28 = vadd.f32 %v443_v26, %v442_v24 }
 0x26f   :  { %v439_v29 = vadd.f32 %v438_v27, %v437_v25  ;;  %v445_v30 = vrot.slane %v444_v28, 1 }
 0x271   :  { %573 = vrcp.f32 %v439_v29  ;;  %v446_v31 = vadd.f32 %v445_v30, %v444_v28 }
 0x273   :  { %575 = vrcp.f32 %v446_v31 }
 0x27b   :  { %v574_v32 = vpop.eup %573 }
 0x27c   :  { %v448_v33 = vmul.f32 %v574_v32, %v570_v16 }
 0x27d   :  { %v576_v34 = vpop.eup %575 }
 0x27e   :  { %v450_v35 = vmul.f32 %v576_v34, %v572_v18  ;;  %v451_v36 = vmul.f32 %v448_v33, %v306_v52 }
 0x280   :  { %v452_v37 = vmul.f32 %v450_v35, %v338_v51  ;;  %v453_v38 = vsel %vm363_vm4, %v451_v36, 0.0 }
 0x281   :  { %v454_v39 = vrot.slane %v453_v38, 4 }
 0x282   :  { %v460_v40 = vsel %vm363_vm4, %v452_v37, 0.0 }
 0x283   :  { %v455_v41 = vadd.f32 %v454_v39, %v453_v38  ;;  %v461_v42 = vrot.slane %v460_v40, 4 }
 0x285   :  { %v456_v43 = vrot.slane %v455_v41, 2  ;;  %v462_v44 = vadd.f32 %v461_v42, %v460_v40 }
 0x287   :  { %v457_v45 = vadd.f32 %v456_v43, %v455_v41  ;;  %v463_v46 = vrot.slane %v462_v44, 2 }
 0x289   :  { %v458_v47 = vrot.slane %v457_v45, 1  ;;  %v464_v48 = vadd.f32 %v463_v46, %v462_v44 }
 0x28b   :  { %v465_v49 = vrot.slane %v464_v48, 1  ;;  %v459_v50 = vadd.f32 %v458_v47, %v457_v45 }
 0x28d   :  { %v466_v52 = vadd.f32 %v465_v49, %v464_v48 }
 0x28f   :  { %v470_v51 = vsel %vm469_vm6, %v466_v52, %v459_v50 }
 0x290   :  { %473 = vst.msk [vmem:[#allocation2] sm:$0x3] %vm472_vm7, %v470_v51 }
 0x291   :  { %588 = shalt.err (!%p585_p4)
}
 0x292   :  { %s589_s10 = scalar_lea.hbm %s692_s4, 32 }
 0x293   :  { %p590_p5 = scmp.ne.s32.totalorder %s692_s4, %s589_s10  ;;  %p593_p6 = scmp.lt.u32.totalorder %s589_s10, %s692_s4 }
 0x295   :  { %p595_p7 = pnand %p593_p6, %p590_p5 }
 0x297   :  { %598 = shalt.err (!%p595_p7)
}
 0x298   :  { %483 = dma.vmem_to_hbm [thread:$0]  %s481_s6, 32, %s692_s4, [#allocation3]  }
 0x299   :  { %599 = dma.done.wait [#allocation3], 32  }
 0x29a   :  { %600 = vsyncadd [#allocation3], 4294967264 }
 0x29b   :  { %487 = vsyncpa [#allocation3], 1 }

// kernel: tpu_custom_call.1
= control target key start
LH: loop header
LB: loop body
LE: loop exit
PB: predicated region body
PF: predicated region fallthrough
CT: control target
= control target key end

     0   :  { %vm49_vm0 = vcmask 261120   ;;  %s688_s0 = inlined_call_operand.vmem [shape: bf16[2,16,32], index: 0, kind: input, shape index: {}]   ;;  %s689_s1 = inlined_call_operand.vmem [shape: bf16[3,32,8], index: 1, kind: input, shape index: {}]   ;;  %s690_s2 = inlined_call_operand.vmem [shape: f32[1,8], index: 2, kind: input, shape index: {}]   ;;  %s691_s3 = inlined_call_operand.vmem [shape: bf16[16,16], index: 3, kind: input, shape index: {}]   ;;  %s692_s4 = inlined_call_operand.hbm [shape: f32[2,16], index: 4, kind: output, shape index: {}]  }
   0x1   :  { %v560_v0 = vld [vmem:[%s689_s1] sm:$0xff]   ;;  %v561_v1 = vld [vmem:[%s689_s1 + $0x10] sm:$0xff]   ;;  %v562_v2 = vld [vmem:[%s689_s1 + $0x8] sm:$0xff]  }
   0x2   :  { %527 = vmatprep.subr.bf16.mxu0 %v560_v0  ;;  %535 = vmatprep.subr.bf16.mxu1 %v561_v1  ;;  %v563_v3 = vld [vmem:[%s688_s0] sm:$0xff]   ;;  %v564_v4 = vld [vmem:[%s689_s1 + $0x18] sm:$0xff]   ;;  %v565_v5 = vld [vmem:[%s688_s0 + $0x8] sm:$0xff]  }
   0x3   :  { %528 = vmatpush3.bf16.msra.mxu0 %v560_v0  ;;  %536 = vmatpush3.bf16.msra.mxu1 %v561_v1  ;;  %v566_v6 = vld [vmem:[%s689_s1 + $0x20] sm:$0xff]   ;;  %v567_v7 = vld [vmem:[%s689_s1 + $0x28] sm:$0xff]  }
   0x4   :  { %529 = vmatprep.subr.bf16.mxu0 %v562_v2  ;;  %531 = vmatprep.mubr.msk.bf16.mxu0 %vm49_vm0, %v563_v3 }
   0x5   :  { %539 = vmatprep.mubr.msk.bf16.mxu1 %vm49_vm0, %v563_v3  ;;  %537 = vmatprep.subr.bf16.mxu1 %v564_v4 }
   0x7   :  { %530 = vmatpush3.bf16.msra.mxu0 %v562_v2  ;;  %538 = vmatpush3.bf16.msra.mxu1 %v564_v4 }
   0x8   :  { %543 = vmatprep.subr.bf16.mxu0 %v566_v6 }
   0x9   :  { %9 = vsyncpa [#allocation3], 0  ;;  %v568_v8 = vld [vmem:[%s691_s3] sm:$0xff]   ;;  %v601_v9 = vmov 0.0   ;;  %vm241_vm1 = vcmask 1040384   ;;  %vm262_vm2 = vcmask 1046528   ;;  %v408_v54 = vlaneseq }
   0xa   :  { %532 = vmatmul.mubr.msk.bf16.vlgmr.msra.gmra.mrb[0].mxu0 %vm49_vm0, %v565_v5  ;;  %540 = vmatmul.mubr.msk.bf16.vlgmr.msra.gmra.mrb[0].mxu1 %vm49_vm0, %v565_v5  ;;  %v510_v40 = vld [vmem:[%s690_s2] ss:$0 sm:$0xff]  ;;  %vm602_vm3 = vmmov 0   ;;  %vm363_vm4 = vcmask 130048   ;;  %s603_s2 = smov [#allocation2]   ;;  %vm469_vm6 = vcmask 1041409  }
   0xb   :  { %544 = vmatpush3.bf16.msra.mxu0 %v566_v6  ;;  %547 = vmatprep.mubr.msk.bf16.mxu0 %vm49_vm0, %v563_v3  ;;  %v409_v55 = vshrl.u32 %v408_v54, 7  ;;  %s480_s6 = sshll.u32 %s603_s2, 4  ;;  %vm472_vm7 = vcmask 123904   ;;  %s481_s6 = int_to_ptr.vmem [resolvable:$true] %s480_s6 }
   0xc   :  { %545 = vmatprep.subr.bf16.mxu0 %v567_v7  ;;  %551 = vmatprep.subr.bf16.mxu1 %v601_v9  ;;  %s577_s7 = scalar_lea.vmem %s481_s6, 32  ;;  %p582_p1 = scmp.lt.s32.totalorder %s481_s6, %s481_s6 }
   0xd   :  { %552 = vmatpush3.bf16.msra.mxu1 %v568_v8  ;;  %553 = vmatprep.mubr.msk.bf16.mxu1 %vm602_vm3, %v601_v9  ;;  %vm410_vm5 = vcmp.lt.s32.totalorder %v409_v55, 5  ;;  %p578_p0 = scmp.ne.s32.totalorder %s481_s6, %s577_s7  ;;  %p583_p2 = scmp.lt.s32.totalorder %s577_s7, %s577_s7 }
   0xf   :  { %546 = vmatpush3.bf16.msra.mxu0 %v567_v7  ;;  %p584_p3 = por %p583_p2, %p582_p1 }
  0x11   :  { %p585_p4 = pnand %p584_p3, %p578_p0 }
  0x12   :  { %548 = vmatmul.mubr.msk.bf16.vlgmr.msra.gmra.mrb[4].mxu0 %vm49_vm0, %v565_v5 }
  0xdd   :  { %v533_v10 = vpop.f32.mrb[0].mxu0  ;;  %v541_v13 = vpop.f32.mrb[0].mxu1 }
  0xde   :  { %v245_v11 = vrot.slane %v533_v10, 7  ;;  %v90_v12 = vpop.f32.mrb[1].mxu0  ;;  %v156_v16 = vpop.f32.mrb[1].mxu1 }
  0xdf   :  { %v242_v14 = vrot.slane %v90_v12, 7  ;;  %v534_v15 = vpop.f32.mrb[2].mxu0  ;;  %v542_v20 = vpop.f32.mrb[2].mxu1 }
  0xe0   :  { %v246_v17 = vrot.slane %v534_v15, 7  ;;  %v93_v18 = vpop.f32.mrb[3].mxu0  ;;  %v253_v19 = vsel %vm241_vm1, 0.0, %v245_v11  ;;  %v159_v24 = vpop.f32.mrb[3].mxu1 }
  0xe1   :  { %v243_v21 = vrot.slane %v93_v18, 7  ;;  %v256_v22 = vadd.f32 %v541_v13, %v253_v19  ;;  %v252_v23 = vsel %vm241_vm1, 0.0, %v242_v14 }
  0xe2   :  { %v254_v25 = vadd.f32 %v252_v23, %v156_v16  ;;  %v247_v26 = vsel %vm241_vm1, %v245_v11, %v246_v17 }
  0xe3   :  { %v257_v27 = vadd.f32 %v542_v20, %v247_v26  ;;  %v244_v28 = vsel %vm241_vm1, %v242_v14, %v243_v21 }
  0xe4   :  { %v255_v29 = vadd.f32 %v244_v28, %v159_v24 }
  0xe5   :  { %v549_v30 = vpop.f32.mrb[4].mxu0 }
  0xe6   :  { %v222_v31 = vpop.f32.mrb[5].mxu0  ;;  %v266_v33 = vrot.slane %v549_v30, 1 }
  0xe7   :  { %v550_v32 = vpop.f32.mrb[6].mxu0  ;;  %v263_v36 = vrot.slane %v222_v31, 1 }
  0xe8   :  { %v267_v34 = vrot.slane %v550_v32, 1  ;;  %v225_v35 = vpop.f32.mrb[7].mxu0 }
  0xe9   :  { %v264_v37 = vrot.slane %v225_v35, 1 }
  0xea   :  { %v274_v38 = vsel %vm262_vm2, %v267_v34, 0.0  ;;  %v268_v39 = vsel %vm262_vm2, %v266_v33, %v267_v34 }
  0xeb   :  { %v273_v41 = vsel %vm262_vm2, %v264_v37, 0.0  ;;  %v277_v42 = vadd.f32 %v268_v39, %v256_v22  ;;  %v265_v43 = vsel %vm262_vm2, %v263_v36, %v264_v37  ;;  %v278_v44 = vadd.f32 %v274_v38, %v257_v27 }
  0xec   :  { %v276_v45 = vadd.f32 %v273_v41, %v255_v29  ;;  %v275_v46 = vadd.f32 %v265_v43, %v254_v25 }
  0xed   :  { %v288_v47 = vadd.f32 %v510_v40, %v277_v42  ;;  %v289_v49 = vadd.f32 %v510_v40, %v278_v44 }
  0xee   :  { %v286_v48 = vadd.f32 %v510_v40, %v275_v46  ;;  %v287_v50 = vadd.f32 %v510_v40, %v276_v45 }
  0xef   :  { %322 = vxpose.xlu1.b32.start [1/2] (short) (narrow) %v288_v47, 8 }
  0xf0   :  { %290 = vxpose.xlu0.b32.start [1/2] (short) (narrow) %v286_v48, 8 }
  0xf3   :  { %323 = vxpose.xlu1.b32.end [2/2] (short) (narrow) %v289_v49, 8 }
  0xf4   :  { %291 = vxpose.xlu0.b32.end [2/2] (short) (narrow) %v287_v50, 8 }
 0x16f   :  { %v338_v51 = vpop.trf.xlu1 }
 0x170   :  { %v306_v52 = vpop.trf.xlu0 }
 0x171   :  { %v354_v53 = vpack.c.bf16 %v338_v51, %v306_v52 }
 0x173   :  { %554 = vmatmul.mubr.msk.bf16.vlgmr.msra.gmra.mrb[4].mxu1 %vm363_vm4, %v354_v53 }
 0x246   :  { %v401_v56 = vpop.f32.mrb[4].mxu1 }
 0x247   :  { %v411_v57 = vsel %vm410_vm5, %v401_v56, -1e+30  ;;  %v555_v58 = vpop.f32.mrb[5].mxu1 }
 0x248   :  { %v413_v59 = vsel %vm363_vm4, %v411_v57, -inf  ;;  %v404_v60 = vpop.f32.mrb[6].mxu1 }
 0x249   :  { %v414_v61 = vrot.slane %v413_v59, 4  ;;  %v412_v62 = vsel %vm410_vm5, %v404_v60, -1e+30  ;;  %v556_v63 = vpop.f32.mrb[7].mxu1 }
 0x24a   :  { %v420_v0 = vsel %vm363_vm4, %v412_v62, -inf }
 0x24b   :  { %v415_v1 = vmax.f32 %v413_v59, %v414_v61  ;;  %v421_v2 = vrot.slane %v420_v0, 4 }
 0x24d   :  { %v416_v3 = vrot.slane %v415_v1, 2  ;;  %v422_v4 = vmax.f32 %v420_v0, %v421_v2 }
 0x24f   :  { %v417_v5 = vmax.f32 %v415_v1, %v416_v3  ;;  %v423_v6 = vrot.slane %v422_v4, 2 }
 0x251   :  { %v418_v7 = vrot.slane %v417_v5, 1  ;;  %v424_v8 = vmax.f32 %v422_v4, %v423_v6 }
 0x253   :  { %v419_v9 = vmax.f32 %v417_v5, %v418_v7  ;;  %v425_v10 = vrot.slane %v424_v8, 1 }
 0x255   :  { %v427_v11 = vsub.f32 %v411_v57, %v419_v9  ;;  %v426_v12 = vmax.f32 %v424_v8, %v425_v10 }
 0x257   :  { %v429_v13 = vmul.f32 1.442695, %v427_v11  ;;  %v428_v14 = vsub.f32 %v412_v62, %v426_v12 }
 0x259   :  { %569 = vpow2.f32 %v429_v13  ;;  %v431_v15 = vmul.f32 1.442695, %v428_v14 }
 0x25b   :  { %571 = vpow2.f32 %v431_v15 }
 0x263   :  { %v570_v16 = vpop.eup %569 }
 0x264   :  { %v433_v17 = vsel %vm363_vm4, %v570_v16, 0.0 }
 0x265   :  { %v572_v18 = vpop.eup %571  ;;  %v434_v19 = vrot.slane %v433_v17, 4 }
 0x266   :  { %v440_v20 = vsel %vm363_vm4, %v572_v18, 0.0 }
 0x267   :  { %v435_v21 = vadd.f32 %v434_v19, %v433_v17  ;;  %v441_v22 = vrot.slane %v440_v20, 4 }
 0x269   :  { %v436_v23 = vrot.slane %v435_v21, 2  ;;  %v442_v24 = vadd.f32 %v441_v22, %v440_v20 }
 0x26b   :  { %v437_v25 = vadd.f32 %v436_v23, %v435_v21  ;;  %v443_v26 = vrot.slane %v442_v24, 2 }
 0x26d   :  { %v438_v27 = vrot.slane %v437_v25, 1  ;;  %v444_v28 = vadd.f32 %v443_v26, %v442_v24 }
 0x26f   :  { %v439_v29 = vadd.f32 %v438_v27, %v437_v25  ;;  %v445_v30 = vrot.slane %v444_v28, 1 }
 0x271   :  { %573 = vrcp.f32 %v439_v29  ;;  %v446_v31 = vadd.f32 %v445_v30, %v444_v28 }
 0x273   :  { %575 = vrcp.f32 %v446_v31 }
 0x27b   :  { %v574_v32 = vpop.eup %573 }
 0x27c   :  { %v448_v33 = vmul.f32 %v574_v32, %v570_v16 }
 0x27d   :  { %v576_v34 = vpop.eup %575 }
 0x27e   :  { %v450_v35 = vmul.f32 %v576_v34, %v572_v18  ;;  %v451_v36 = vmul.f32 %v448_v33, %v306_v52 }
 0x280   :  { %v452_v37 = vmul.f32 %v450_v35, %v338_v51  ;;  %v453_v38 = vsel %vm363_vm4, %v451_v36, 0.0 }
 0x281   :  { %v454_v39 = vrot.slane %v453_v38, 4 }
 0x282   :  { %v460_v40 = vsel %vm363_vm4, %v452_v37, 0.0 }
 0x283   :  { %v455_v41 = vadd.f32 %v454_v39, %v453_v38  ;;  %v461_v42 = vrot.slane %v460_v40, 4 }
 0x285   :  { %v456_v43 = vrot.slane %v455_v41, 2  ;;  %v462_v44 = vadd.f32 %v461_v42, %v460_v40 }
 0x287   :  { %v457_v45 = vadd.f32 %v456_v43, %v455_v41  ;;  %v463_v46 = vrot.slane %v462_v44, 2 }
 0x289   :  { %v458_v47 = vrot.slane %v457_v45, 1  ;;  %v464_v48 = vadd.f32 %v463_v46, %v462_v44 }
 0x28b   :  { %v465_v49 = vrot.slane %v464_v48, 1  ;;  %v459_v50 = vadd.f32 %v458_v47, %v457_v45 }
 0x28d   :  { %v466_v52 = vadd.f32 %v465_v49, %v464_v48 }
 0x28f   :  { %v470_v51 = vsel %vm469_vm6, %v466_v52, %v459_v50 }
 0x290   :  { %473 = vst.msk [vmem:[#allocation2] sm:$0x3] %vm472_vm7, %v470_v51 }
 0x291   :  { %588 = shalt.err (!%p585_p4)
}
 0x292   :  { %s589_s10 = scalar_lea.hbm %s692_s4, 32 }
 0x293   :  { %p590_p5 = scmp.ne.s32.totalorder %s692_s4, %s589_s10  ;;  %p593_p6 = scmp.lt.u32.totalorder %s589_s10, %s692_s4 }
 0x295   :  { %p595_p7 = pnand %p593_p6, %p590_p5 }
 0x297   :  { %598 = shalt.err (!%p595_p7)
}
 0x298   :  { %483 = dma.vmem_to_hbm [thread:$0]  %s481_s6, 32, %s692_s4, [#allocation3]  }
 0x299   :  { %599 = dma.done.wait [#allocation3], 32  }
 0x29a   :  { %600 = vsyncadd [#allocation3], 4294967264 }
 0x29b   :  { %487 = vsyncpa [#allocation3], 1 }

</bundles_post_ra>
